<compile_context>
chip_gen: v7x
topology: tpu7x:2x2x1
jax: 0.10.0
libtpu: 0.0.40
codegen_flags: <defaults>
</compile_context>

<pallas_src>
import functools
import math

import jax
import jax.numpy as jnp
from jax.experimental import pallas as pl
from jax.experimental.pallas import tpu as pltpu


# ----------------------------- Pallas kernel -------------------------------- #
def channel_block_kernel(x_ref, s1_ref, b1_ref, w1_ref, b2_ref, w2_ref, o_ref):
    # x_ref: (Cin, TS)  -- channels on sublanes, spatial on lanes
    x = x_ref[...].astype(jnp.float32)
    # BN1 (folded per-channel scale/bias) + ReLU   (BN1 cannot be folded into w1: ReLU between)
    y1 = jnp.maximum(x * s1_ref[...] + b1_ref[...], 0.0)             # (Cin, TS)
    # conv1 (1x1 quaternion conv == channel mixing matmul on the MXU); BN2 scale pre-folded into w1
    z1 = jnp.dot(w1_ref[...], y1.astype(w1_ref.dtype),
                 preferred_element_type=jnp.float32)                  # (Cmid, TS)
    # BN2 bias + ReLU
    y2 = jnp.maximum(z1 + b2_ref[...], 0.0)
    # conv2
    o_ref[...] = jnp.dot(w2_ref[...], y2.astype(w2_ref.dtype),
                         preferred_element_type=jnp.float32).astype(o_ref.dtype)


# ------------------------------- wrapper ------------------------------------ #
def _pick_spatial_tile(hw, cin, cmid, cout, itemsize, budget_bytes=24 << 20):
    """Largest spatial tile (multiple of 128 dividing hw, or hw itself) under a VMEM budget."""
    # Resident bytes per spatial column: double-buffered in/out blocks + f32 intermediates.
    per_col = 2 * (cin + cout) * itemsize + (cin + 2 * cmid) * 4
    max_ts = max(128, budget_bytes // max(per_col, 1))
    if hw <= max_ts:
        return hw
    t = (max_ts // 128) * 128
    while t >= 128:
        if hw % t == 0:
            return t
        t -= 128
    # No clean 128-multiple divisor: take the full spatial extent as a single block
    # (block dim equal to the full array dim is always legal).
    return hw


def channel_block(x_nchw, params, *, storage_dtype=None, spatial_budget_bytes=24 << 20):
    """Fused ChannelBlock forward. x_nchw: (N, 4*inplanes, H, W).

    storage_dtype: optionally cast x / weights (e.g. jnp.bfloat16) for HBM + MXU;
                   BN/ReLU math and matmul accumulation stay f32.
    """
    N, Cin, H, W = x_nchw.shape
    HW = H * W
    x3d = x_nchw.reshape(N, Cin, HW)            # free view, no transpose

    # Fold BN2 scale into conv1 weight rows:  diag(s2) @ w1
    w1f = params["w1"] * params["scale2"][:, None]      # (Cmid, Cin)
    w2 = params["w2"]                                    # (Cout, Cmid)
    if storage_dtype is not None:
        x3d = x3d.astype(storage_dtype)
        w1f = w1f.astype(storage_dtype)
        w2 = w2.astype(storage_dtype)
    out_dtype = x3d.dtype

    Cmid = w1f.shape[0]
    Cout = w2.shape[0]
    s1 = params["scale1"].reshape(Cin, 1).astype(jnp.float32)
    b1 = params["bias1"].reshape(Cin, 1).astype(jnp.float32)
    b2 = params["bias2"].reshape(Cmid, 1).astype(jnp.float32)

    itemsize = jnp.dtype(out_dtype).itemsize
    ts = _pick_spatial_tile(HW, Cin, Cmid, Cout, itemsize, spatial_budget_bytes)
    assert HW % ts == 0
    grid = (N, HW // ts)

    # Explicit scoped-VMEM budget (double-buffered blocks + weights + f32 intermediates).
    est = (2 * (Cin + Cout) * ts * itemsize          # x / out double buffers
           + 2 * (Cmid * Cin + Cout * Cmid) * itemsize  # weight blocks (double-buffered)
           + 2 * (2 * Cin + Cmid) * 4                # scale / bias blocks
           + (Cin + 2 * Cmid) * ts * 4)              # y1 / z1 / y2 intermediates
    vmem_limit = int(min(max(2 * est, 32 << 20), 100 << 20))

    M = N * HW
    cost = pl.CostEstimate(
        flops=2 * M * (Cin * Cmid + Cmid * Cout),
        transcendentals=0,
        bytes_accessed=itemsize * (M * (Cin + Cout) + Cmid * Cin + Cout * Cmid)
                       + 4 * (2 * Cin + Cmid),
    )

    out3d = pl.pallas_call(
        channel_block_kernel,
        out_shape=jax.ShapeDtypeStruct((N, Cout, HW), out_dtype),
        grid_spec=pltpu.PrefetchScalarGridSpec(
            num_scalar_prefetch=0,
            grid=grid,
            in_specs=[
                pl.BlockSpec((None, Cin, ts), lambda n, s: (n, 0, s)),   # x (batch squeezed)
                pl.BlockSpec((Cin, 1), lambda n, s: (0, 0)),             # bn1 scale
                pl.BlockSpec((Cin, 1), lambda n, s: (0, 0)),             # bn1 bias
                pl.BlockSpec((Cmid, Cin), lambda n, s: (0, 0)),          # conv1 weight (bn2 scale folded)
                pl.BlockSpec((Cmid, 1), lambda n, s: (0, 0)),            # bn2 bias
                pl.BlockSpec((Cout, Cmid), lambda n, s: (0, 0)),         # conv2 weight
            ],
            out_specs=pl.BlockSpec((None, Cout, ts), lambda n, s: (n, 0, s)),
        ),
        compiler_params=pltpu.CompilerParams(
            dimension_semantics=("parallel", "parallel"),
            vmem_limit_bytes=vmem_limit,
        ),
        cost_estimate=cost,
    )(x3d, s1, b1, w1f, b2, w2)

    return out3d.reshape(N, Cout, H, W)          # free view, no transpose


# --------------------------- parameter construction ------------------------- #
def hamilton_weight(wr, wi, wj, wk):
    """Dense (4*out_q, 4*in_q) quaternion 1x1-conv matrix from r,i,j,k parts."""
    row_r = jnp.concatenate([wr, -wi, -wj, -wk], axis=1)
    row_i = jnp.concatenate([wi,  wr, -wk,  wj], axis=1)
    row_j = jnp.concatenate([wj,  wk,  wr, -wi], axis=1)
    row_k = jnp.concatenate([wk, -wj,  wi,  wr], axis=1)
    return jnp.concatenate([row_r, row_i, row_j, row_k], axis=0)


def fold_bn(gamma, beta, mean, var, eps=1e-5):
    scale = gamma / jnp.sqrt(var + eps)
    bias = beta - mean * scale
    return scale, bias


def init_params(key, inplanes, planes, factor=1):
    in_q, out_q = inplanes // factor, planes // factor
    c_in, c_mid = 4 * inplanes, 4 * planes
    ks = jax.random.split(key, 16)

    def qw(k0, k1, k2, k3, oq, iq, std):
        return [std * jax.random.normal(k, (oq, iq), jnp.float32)
                for k in (k0, k1, k2, k3)]

    w1 = hamilton_weight(*qw(ks[0], ks[1], ks[2], ks[3], out_q, in_q, 0.3))
    w2 = hamilton_weight(*qw(ks[4], ks[5], ks[6], ks[7], out_q, out_q, 0.3))

    g1 = 1.0 + 0.1 * jax.random.normal(ks[8], (c_in,), jnp.float32)
    bt1 = 0.1 * jax.random.normal(ks[9], (c_in,), jnp.float32)
    m1 = 0.05 * jax.random.normal(ks[10], (c_in,), jnp.float32)
    v1 = 1.0 + 0.1 * jax.random.uniform(ks[11], (c_in,), jnp.float32)

    g2 = 1.0 + 0.1 * jax.random.normal(ks[12], (c_mid,), jnp.float32)
    bt2 = 0.1 * jax.random.normal(ks[13], (c_mid,), jnp.float32)
    m2 = 0.05 * jax.random.normal(ks[14], (c_mid,), jnp.float32)
    v2 = 1.0 + 0.1 * jax.random.uniform(ks[15], (c_mid,), jnp.float32)

    s1, b1 = fold_bn(g1, bt1, m1, v1)
    s2, b2 = fold_bn(g2, bt2, m2, v2)
    return {"w1": w1, "w2": w2, "scale1": s1, "bias1": b1,
            "scale2": s2, "bias2": b2}


# ------------------------------ pure-JAX reference --------------------------- #
def channel_block_ref(x_nchw, params):
    N, C, H, W = x_nchw.shape
    x = x_nchw.reshape(N, C, H * W).astype(jnp.float32)
    y1 = jnp.maximum(x * params["scale1"][None, :, None]
                     + params["bias1"][None, :, None], 0.0)
    z1 = jnp.einsum("oc,ncs->nos", params["w1"], y1)
    y2 = jnp.maximum(z1 * params["scale2"][None, :, None]
                     + params["bias2"][None, :, None], 0.0)
    out = jnp.einsum("oc,ncs->nos", params["w2"], y2)
    return out.reshape(N, -1, H, W)


# TODO(synk): stride > 1 (strided 1x1 conv == spatial subsampling) is not wired into
# the kernel wrapper; the module default stride=1 is implemented.

if __name__ == "__main__":
    inplanes, planes = 4, 4          # real channels = 4 * inplanes = 16
    N, H, W = 2, 16, 16
    key = jax.random.PRNGKey(0)
    kx, kp = jax.random.split(key)

    x = jax.random.normal(kx, (N, 4 * inplanes, H, W), jnp.float32)
    params = init_params(kp, inplanes, planes)

    out = jax.block_until_ready(channel_block(x, params))
    ref = channel_block_ref(x, params)

    assert out.shape == (N, 4 * planes, H, W)
    assert jnp.allclose(out, ref, atol=2e-4, rtol=2e-4)
    print("KERNEL_OK")
</pallas_src>

<mosaic_0001>
module attributes {stable_mosaic.version = 11 : i64} {
  func.func @channel_block_kernel(%arg0: i32, %arg1: i32, %arg2: memref<1x16x256xf32, #tpu.memory_space<vmem>>, %arg3: memref<16x1xf32, #tpu.memory_space<vmem>>, %arg4: memref<16x1xf32, #tpu.memory_space<vmem>>, %arg5: memref<16x16xf32, #tpu.memory_space<vmem>>, %arg6: memref<16x1xf32, #tpu.memory_space<vmem>>, %arg7: memref<16x16xf32, #tpu.memory_space<vmem>>, %arg8: memref<1x16x256xf32, #tpu.memory_space<vmem>>) attributes {dimension_semantics = [#tpu.dimension_semantics<parallel>, #tpu.dimension_semantics<parallel>], iteration_bounds = array<i64: 2, 1>, scalar_prefetch = 0 : i64, scratch_operands = 0 : i64, tpu.core_type = #tpu.core_type<tc>, window_params = [{transform_indices = @transform_0, window_bounds = array<i64: 1, 16, 256>}, {pipeline_mode = #tpu.pipeline_mode<synchronous>, transform_indices = @transform_1, window_bounds = array<i64: 16, 1>}, {pipeline_mode = #tpu.pipeline_mode<synchronous>, transform_indices = @transform_2, window_bounds = array<i64: 16, 1>}, {pipeline_mode = #tpu.pipeline_mode<synchronous>, transform_indices = @transform_3, window_bounds = array<i64: 16, 16>}, {pipeline_mode = #tpu.pipeline_mode<synchronous>, transform_indices = @transform_4, window_bounds = array<i64: 16, 1>}, {pipeline_mode = #tpu.pipeline_mode<synchronous>, transform_indices = @transform_5, window_bounds = array<i64: 16, 16>}, {transform_indices = @transform_6, window_bounds = array<i64: 1, 16, 256>}]} {
    %c0 = arith.constant 0 : index
    %c0_0 = arith.constant 0 : index
    %c0_1 = arith.constant 0 : index
    %0 = vector.load %arg2[%c0, %c0_0, %c0_1] : memref<1x16x256xf32, #tpu.memory_space<vmem>>, vector<1x16x256xf32>
    %1 = vector.shape_cast %0 : vector<1x16x256xf32> to vector<16x256xf32>
    %c0_2 = arith.constant 0 : index
    %c0_3 = arith.constant 0 : index
    %2 = vector.load %arg3[%c0_2, %c0_3] : memref<16x1xf32, #tpu.memory_space<vmem>>, vector<16x1xf32>
    %3 = vector.broadcast %2 : vector<16x1xf32> to vector<16x256xf32>
    %4 = arith.mulf %1, %3 : vector<16x256xf32>
    %c0_4 = arith.constant 0 : index
    %c0_5 = arith.constant 0 : index
    %5 = vector.load %arg4[%c0_4, %c0_5] : memref<16x1xf32, #tpu.memory_space<vmem>>, vector<16x1xf32>
    %6 = vector.broadcast %5 : vector<16x1xf32> to vector<16x256xf32>
    %7 = arith.addf %4, %6 : vector<16x256xf32>
    %cst = arith.constant 0.000000e+00 : f32
    %8 = vector.broadcast %cst : f32 to vector<16x256xf32>
    %9 = arith.maximumf %7, %8 : vector<16x256xf32>
    %c0_6 = arith.constant 0 : index
    %c0_7 = arith.constant 0 : index
    %10 = vector.load %arg5[%c0_6, %c0_7] : memref<16x16xf32, #tpu.memory_space<vmem>>, vector<16x16xf32>
    %cst_8 = arith.constant dense<0.000000e+00> : vector<16x256xf32>
    %11 = tpu.matmul %10, %9, %cst_8 {dimension_numbers = #tpu.dot_dimension_numbers<[1], [0], [0], [1], [0, 0, 1, 1], [], []>} : vector<16x16xf32>, vector<16x256xf32>, vector<16x256xf32> -> vector<16x256xf32>
    %c0_9 = arith.constant 0 : index
    %c0_10 = arith.constant 0 : index
    %12 = vector.load %arg6[%c0_9, %c0_10] : memref<16x1xf32, #tpu.memory_space<vmem>>, vector<16x1xf32>
    %13 = vector.broadcast %12 : vector<16x1xf32> to vector<16x256xf32>
    %14 = arith.addf %11, %13 : vector<16x256xf32>
    %cst_11 = arith.constant 0.000000e+00 : f32
    %15 = vector.broadcast %cst_11 : f32 to vector<16x256xf32>
    %16 = arith.maximumf %14, %15 : vector<16x256xf32>
    %c0_12 = arith.constant 0 : index
    %c0_13 = arith.constant 0 : index
    %17 = vector.load %arg7[%c0_12, %c0_13] : memref<16x16xf32, #tpu.memory_space<vmem>>, vector<16x16xf32>
    %cst_14 = arith.constant dense<0.000000e+00> : vector<16x256xf32>
    %18 = tpu.matmul %17, %16, %cst_14 {dimension_numbers = #tpu.dot_dimension_numbers<[1], [0], [0], [1], [0, 0, 1, 1], [], []>} : vector<16x16xf32>, vector<16x256xf32>, vector<16x256xf32> -> vector<16x256xf32>
    %c0_15 = arith.constant 0 : index
    %c0_16 = arith.constant 0 : index
    %c0_17 = arith.constant 0 : index
    %19 = vector.load %arg8[%c0_15, %c0_16, %c0_17] : memref<1x16x256xf32, #tpu.memory_space<vmem>>, vector<1x16x256xf32>
    %20 = vector.shape_cast %19 : vector<1x16x256xf32> to vector<16x256xf32>
    %21 = vector.shape_cast %18 : vector<16x256xf32> to vector<1x16x256xf32>
    tpu.vector_store %arg8[%c0_15, %c0_16, %c0_17], %21 {strides = array<i32>} : memref<1x16x256xf32, #tpu.memory_space<vmem>>, vector<1x16x256xf32>,
    return
  }
  func.func @transform_0(%arg0: i32, %arg1: i32) -> (i32, i32, i32) {
    %c0_i32 = arith.constant 0 : i32
    %c0_i32_0 = arith.constant 0 : i32
    return %arg0, %c0_i32, %arg1 : i32, i32, i32
  }
  func.func @transform_1(%arg0: i32, %arg1: i32) -> (i32, i32) {
    %c0_i32 = arith.constant 0 : i32
    %c0_i32_0 = arith.constant 0 : i32
    %c0_i32_1 = arith.constant 0 : i32
    return %c0_i32, %c0_i32_0 : i32, i32
  }
  func.func @transform_2(%arg0: i32, %arg1: i32) -> (i32, i32) {
    %c0_i32 = arith.constant 0 : i32
    %c0_i32_0 = arith.constant 0 : i32
    %c0_i32_1 = arith.constant 0 : i32
    return %c0_i32, %c0_i32_0 : i32, i32
  }
  func.func @transform_3(%arg0: i32, %arg1: i32) -> (i32, i32) {
    %c0_i32 = arith.constant 0 : i32
    %c0_i32_0 = arith.constant 0 : i32
    %c0_i32_1 = arith.constant 0 : i32
    return %c0_i32, %c0_i32_0 : i32, i32
  }
  func.func @transform_4(%arg0: i32, %arg1: i32) -> (i32, i32) {
    %c0_i32 = arith.constant 0 : i32
    %c0_i32_0 = arith.constant 0 : i32
    %c0_i32_1 = arith.constant 0 : i32
    return %c0_i32, %c0_i32_0 : i32, i32
  }
  func.func @transform_5(%arg0: i32, %arg1: i32) -> (i32, i32) {
    %c0_i32 = arith.constant 0 : i32
    %c0_i32_0 = arith.constant 0 : i32
    %c0_i32_1 = arith.constant 0 : i32
    return %c0_i32, %c0_i32_0 : i32, i32
  }
  func.func @transform_6(%arg0: i32, %arg1: i32) -> (i32, i32, i32) {
    %c0_i32 = arith.constant 0 : i32
    %c0_i32_0 = arith.constant 0 : i32
    return %arg0, %c0_i32, %arg1 : i32, i32, i32
  }
}

</mosaic_0001>

<bundles_post_ra>
// kernel: tpu_custom_call.1
= control target key start
LH: loop header
LB: loop body
LE: loop exit
PB: predicated region body
PF: predicated region fallthrough
CT: control target
= control target key end

     0   :  { %11 = vsyncpa [#allocation3], 0  ;;  %s1093_s0 = inlined_call_operand.hbm [shape: f32[2,16,256], index: 0, kind: input, shape index: {}]   ;;  %s1094_s1 = inlined_call_operand.vmem [shape: f32[16,1], index: 1, kind: input, shape index: {}]   ;;  %s1095_s2 = inlined_call_operand.vmem [shape: f32[16,1], index: 2, kind: input, shape index: {}]   ;;  %s1096_s3 = inlined_call_operand.vmem [shape: f32[16,16], index: 3, kind: input, shape index: {}]   ;;  %s1097_s4 = inlined_call_operand.vmem [shape: f32[16,1], index: 4, kind: input, shape index: {}]   ;;  %s1098_s5 = inlined_call_operand.vmem [shape: f32[16,16], index: 5, kind: input, shape index: {}]   ;;  %s1099_s6 = inlined_call_operand.hbm [shape: f32[2,16,256], index: 6, kind: output, shape index: {}]  }
   0x1   :  { %13 = vsyncpa [#allocation3 + $0x1], 0 }
   0x2   :  { %14 = vsyncpa [#allocation4], 0 }
   0x3   :  { %16 = vsyncpa [#allocation4 + $0x1], 0  ;;  %s880_s21 = smov 0   ;;  %s882_s22 = smov 0  }
   0x4   :  { %s884_s23 = smov 0   ;;  %s886_s24 = smov 0  }
   0x5   :  { %s888_s25 = smov 0   ;;  %s890_s26 = smov 0  }
   0x6 LB: > { %s624_s27 = sadd.s32 4294967295, %s835_s26   ;;  %s625_s28 = sadd.s32 4294967294, %s835_s26   ;;  %s835_s26 = sphi %s890_s26, %s22_s26   ;;  %s831_s25 = sphi %s888_s25, %s1114_s25   ;;  %s827_s24 = sphi %s886_s24, %s1113_s24   ;;  %s823_s23 = sphi %s884_s23, %s1112_s23   ;;  %s819_s22 = sphi %s882_s22, %s1111_s22   ;;  %s815_s21 = sphi %s880_s21, %s1110_s21  }
   0x7   : > { %s34_s29 = sadd.s32 1, %s831_s25  ;;  %s43_s30 = sadd.s32 1, %s823_s23 }
   0x8   : > { %p36_p0 = scmp.ge.s32.totalorder %s34_s29, 2  ;;  %p50_p1 = scmp.ne.s32.totalorder %s823_s23, %s819_s22 }
   0x9   : > { %p51_p2 = scmp.eq.s32.totalorder %s835_s26, 0  ;;  %p56_p3 = scmp.ne.s32.totalorder %s819_s22, %s815_s21 }
   0xa   : > { %s1116_s29 = smov (%p36_p0, %s34_s29), 0  ;;  %p57_p5 = scmp.eq.s32.totalorder %s624_s27, 0 }
   0xb   : > { %p921_p4 = por %p51_p2, %p50_p1  ;;  %s38_s8 = ssub.s32 %s831_s25, %s1116_s29 }
   0xc   : > { %p187_p6 = scmp.eq.s32.totalorder %s624_s27, 1  ;;  %p41_p7 = scmp.eq.s32.totalorder %s38_s8, 0 }
   0xd   : > { %p927_p8 = por %p57_p5, %p56_p3  ;;  %p193_p10 = scmp.eq.s32.totalorder %s625_s28, 1 }
   0xe   : > { %p931_p9 = por %p187_p6, %p50_p1  ;;  %p665_p13 = scmp.lt.s32.totalorder %s835_s26, 2 }
   0xf   : > { %s936_s11 = scalar_select %p41_p7, %s823_s23, %s43_s30  }
  0x10   : > { %s1103_s10 = scalar_select %p931_p9, 1, 0 }
  0x11   : > { %p938_p11 = por %p193_p10, %p56_p3  ;;  %s228_s13 = sand.u32 1, %s823_s23  }
  0x12   : > { %s628_s14 = sshll.u32 %s228_s13, 5  ;;  %s643_s15 = sshll.u32 %s831_s25, 9 }
  0x13   : > { %s1104_s12 = scalar_select %p938_p11, 1, 0 }
  0x14   : > { %s949_s18 = scalar_lea.hbm %s1093_s0, %s643_s15  ;;  %s232_s19 = scalar_lea.vmem [#allocation2], %s628_s14 }
  0x15   : > { %s241_s20 = sshll.u32 %s232_s19, 4  ;;  %p955_p0 = pnand %p665_p13, %p921_p4  ;;  %s951_s20 = int_to_ptr.vmem [resolvable:$true] %s241_s20 }
  0x16   : > { %s960_s28 = scalar_lea.sflag [#allocation3], %s228_s13  ;;  %s723_s30 = scalar_lea.hbm %s949_s18, 512 }
  0x17   : > { %p724_p2 = scmp.ne.s32.totalorder %s949_s18, %s723_s30  ;;  %p725_p3 = pneg %p955_p0 }
  0x18   : > { %s728_s7 = scalar_lea.hbm %s1093_s0, 1024  ;;  %p729_p4 = scmp.lt.u32.totalorder %s949_s18, %s1093_s0 }
  0x19   : > { %p726_p5 = pnand %p725_p3, %p724_p2  ;;  %p730_p7 = scmp.lt.u32.totalorder %s728_s7, %s723_s30 }
  0x1a   : > { %p732_p13 = scmp.lt.u32.totalorder %s723_s30, %s949_s18 }
  0x1b   : > { %p727_p6 = pneg %p726_p5  ;;  %p731_p10 = por %p730_p7, %p729_p4 }
  0x1d   : > { %p733_p12 = por %p732_p13, %p731_p10 }
  0x1f   : > { %p734_p1 = pnand %p733_p12, %p727_p6 }
  0x21   : > { %737 = shalt.err (!%p734_p1)
}
  0x22   : > { %s738_s13 = scalar_lea.vmem %s951_s20, 512  ;;  %s837_s17 = smov [#allocation2]  }
  0x23   : > { %p739_p2 = scmp.ne.s32.totalorder %s951_s20, %s738_s13  ;;  %s743_s19 = sshll.u32 %s837_s17, 4  ;;  %s744_s19 = int_to_ptr.vmem [resolvable:$false] %s743_s19 }
  0x24   : > { %s745_s8 = scalar_lea.vmem %s744_s19, 1024  ;;  %p746_p9 = scmp.lt.s32.totalorder %s951_s20, %s744_s19 }
  0x25   : > { %p741_p5 = pnand %p739_p2, %p725_p3  ;;  %p747_p4 = scmp.lt.s32.totalorder %s745_s8, %s738_s13 }
  0x27   : > { %p742_p11 = pneg %p741_p5  ;;  %p748_p7 = por %p747_p4, %p746_p9 }
  0x29   : > { %p749_p10 = pnand %p748_p7, %p742_p11 }
  0x2b   : > { %752 = shalt.err (!%p749_p10)
}
  0x2c   : > { %s838_s30 = smov 256   ;;  %s839_s14 = smov 16  }
  0x2d   : > { %660 = dma.hbm_to_vmem [thread:$0]  (!%p955_p0), %s949_s18, 512, %s951_s20, %s960_s28, %s838_s30, %s838_s30, %s839_s14  }
  0x2e   : > { %p249_p12 = scmp.lt.s32.totalorder %s835_s26, 3  ;;  %p1106_p1 = scmp.ge.s32.totalorder %s835_s26, 1 }
  0x30   : > { %p250_p3 = pnand %p1106_p1, %p249_p12 }
  0x31   : > { %s992_s7 = sand.u32 (!%p250_p3), 1, %s819_s22  }
  0x32   : > { %253 = sbr.rel (%p250_p3) target bundleno = 663 (0x297), region = 44  ;;  %s632_s15 = sshll.u32 (!%p250_p3), %s992_s7, 5 }
  0x33   : > { %s256_s16 = scalar_lea.sflag (!%p250_p3), [#allocation3], %s992_s7  ;;  %s259_s13 = scalar_lea.vmem (!%p250_p3), [#allocation2], %s632_s15 }
  0x39   : > { %806 = dma.done.wait (%p927_p8), %s256_s16, 512  }
  0x3a   : > { %808 = vsyncadd (%p927_p8), %s256_s16, 4294966784  ;;  %v840_v0 = vmov 0   ;;  %v310_v1 = vld [vmem:[%s1095_s2] sm:$0xff]  ;;  %v311_v3 = vld [vmem:[%s1095_s2 + $0x8] sm:$0xff]  ;;  %v841_v7 = vmov 0.0   ;;  %vm344_vm0 = vcmask 130048  }
  0x3b   : > { %722 = vset.pattern.permute.xlu1 %v840_v0  ;;  %721 = vset.pattern.permute.xlu0 %v840_v0  ;;  %v294_v2 = vld [vmem:[%s1094_s1] sm:$0xff]  ;;  %v295_v4 = vld [vmem:[%s1094_s1 + $0x8] sm:$0xff]  ;;  %v292_v14 = vld [vmem:[%s259_s13 + $0x10] sm:$0xff]  ;;  %s287_s30 = scalar_lea.vmem [#allocation5], %s632_s15  ;;  %s644_s16 = sshll.u32 %s827_s24, 9 }
  0x3c   : > { %314 = vperm.xlu1 %722, %v310_v1   ;;  %298 = vperm.xlu0 %721, %v294_v2   ;;  %v333_v5 = vld [vmem:[%s1097_s4 + $0x8] sm:$0xff]  ;;  %v332_v6 = vld [vmem:[%s1097_s4] sm:$0xff]  ;;  %v293_v15 = vld [vmem:[%s259_s13 + $0x18] sm:$0xff]  ;;  %s537_s14 = sshll.u32 %s287_s30, 4  ;;  %s1044_s27 = scalar_lea.hbm %s1099_s6, %s644_s16  ;;  %s1039_s14 = int_to_ptr.vmem [resolvable:$true] %s537_s14 }
  0x3d   : > { %415 = vmatprep.mubr.f32.mxu0 %v841_v7  ;;  %504 = vmatprep.mubr.f32.mxu1 %v841_v7  ;;  %v290_v8 = vld [vmem:[%s259_s13] sm:$0xff]  ;;  %v291_v9 = vld [vmem:[%s259_s13 + $0x8] sm:$0xff]  ;;  %s522_s15 = scalar_lea.sflag [#allocation4], %s992_s7  ;;  %s753_s13 = scalar_lea.vmem %s1039_s14, 512 }
  0x3e   : > { %v330_v30 = vld [vmem:[%s1096_s3] sm:$0xff]  ;;  %v331_v31 = vld [vmem:[%s1096_s3 + $0x8] sm:$0xff]  ;;  %p754_p8 = scmp.ne.s32.totalorder %s1039_s14, %s753_s13  ;;  %p1107_p9 = scmp.ne.s32.totalorder %s1103_s10, 0 }
  0x3f   : > { %v432_v48 = vld [vmem:[%s1098_s5] sm:$0xff]  ;;  %v433_v49 = vld [vmem:[%s1098_s5 + $0x8] sm:$0xff]  ;;  %s842_s24 = smov [#allocation5]  }
  0x40   : > { %319 = vperm.xlu1 %722, %v311_v3   ;;  %303 = vperm.xlu0 %721, %v295_v4   ;;  %p755_p11 = pnand %p754_p8, %p1107_p9  ;;  %s757_s28 = sshll.u32 %s842_s24, 4  ;;  %s758_s28 = int_to_ptr.vmem [resolvable:$false] %s757_s28 }
  0x41   : > { %s759_s17 = scalar_lea.vmem %s758_s28, 1024  ;;  %p760_p6 = scmp.lt.s32.totalorder %s1039_s14, %s758_s28 }
  0x42   : > { %p756_p0 = pneg %p755_p11  ;;  %p761_p13 = scmp.lt.s32.totalorder %s759_s17, %s753_s13 }
  0x44   : > { %341 = vperm.xlu1 %722, %v333_v5   ;;  %336 = vperm.xlu0 %721, %v332_v6   ;;  %p762_p2 = por %p761_p13, %p760_p6 }
  0x46   : > { %p763_p5 = pnand %p762_p2, %p756_p0 }
  0xbb   : > { %v315_v10 = vpop.permute.xlu1 %314  ;;  %v299_v11 = vpop.permute.xlu0 %298 }
  0xbc   : > { %v306_v12 = vmul.f32 %v299_v11, %v290_v8  ;;  %v307_v13 = vmul.f32 %v299_v11, %v291_v9 }
  0xbe   : > { %v322_v17 = vadd.f32 %v315_v10, %v306_v12  ;;  %v323_v20 = vadd.f32 %v315_v10, %v307_v13 }
  0xbf   : > { %v304_v16 = vpop.permute.xlu0 %303  ;;  %v320_v21 = vpop.permute.xlu1 %319 }
  0xc0   : > { %v308_v18 = vmul.f32 %v304_v16, %v292_v14  ;;  %v309_v19 = vmul.f32 %v304_v16, %v293_v15  ;;  %v327_v24 = vmax.f32 %v323_v20, 0.0  ;;  %v326_v26 = vmax.f32 %v322_v17, 0.0 }
  0xc2   : > { %v324_v22 = vadd.f32 %v320_v21, %v308_v18  ;;  %v325_v23 = vadd.f32 %v320_v21, %v309_v19 }
  0xc3   : > { %v337_v34 = vpop.permute.xlu0 %336  ;;  %v342_v36 = vpop.permute.xlu1 %341 }
  0xc4   : > { %v329_v25 = vmax.f32 %v325_v23, 0.0  ;;  %v328_v27 = vmax.f32 %v324_v22, 0.0 }
  0xc6   : > { %v645_v28 = vpack.c.bf16 %v329_v25, %v327_v24  ;;  %v647_v29 = vpack.c.bf16 %v328_v27, %v326_v26 }
  0xc8   : > { %646 = vmatprep.subr.bf16.mxu0 %v645_v28 }
  0xc9   : > { %648 = vmatpush1.bf16.msra.mxu0 %v647_v29 }
  0xcc   : > { %634 = vmatmul.mubr.msk.f32.vlgmr.msra.gmra.mrb[0].mxu0 %vm344_vm0, %v330_v30 }
  0xcd   : > { %421 = vmatprep.mubr.f32.mxu0 %v841_v7 }
  0xd0   : > { %635 = vmatmul.mubr.msk.f32.gmra.mrb[2].mxu0 %vm344_vm0, %v331_v31 }
 0x19f   : > { %v417_v32 = vpop.f32.mrb[0].mxu0 }
 0x1a0   : > { %v419_v33 = vpop.f32.mrb[1].mxu0  ;;  %v418_v35 = vadd.f32 %v417_v32, %v337_v34 }
 0x1a1   : > { %v420_v37 = vadd.f32 %v419_v33, %v337_v34 }
 0x1a2   : > { %v428_v42 = vmax.f32 %v418_v35, 0.0 }
 0x1a3   : > { %v423_v38 = vpop.f32.mrb[2].mxu0  ;;  %v429_v44 = vmax.f32 %v420_v37, 0.0 }
 0x1a4   : > { %v424_v39 = vadd.f32 %v423_v38, %v342_v36  ;;  %v425_v40 = vpop.f32.mrb[3].mxu0 }
 0x1a5   : > { %v426_v41 = vadd.f32 %v425_v40, %v342_v36 }
 0x1a6   : > { %v430_v43 = vmax.f32 %v424_v39, 0.0 }
 0x1a7   : > { %v431_v45 = vmax.f32 %v426_v41, 0.0 }
 0x1a8   : > { %v651_v46 = vpack.c.bf16 %v430_v43, %v428_v42 }
 0x1a9   : > { %v649_v47 = vpack.c.bf16 %v431_v45, %v429_v44 }
 0x1ab   : > { %650 = vmatprep.subr.bf16.mxu1 %v649_v47 }
 0x1ac   : > { %652 = vmatpush1.bf16.msra.mxu1 %v651_v46 }
 0x1af   : > { %636 = vmatmul.mubr.msk.f32.vlgmr.msra.gmra.mrb[0].mxu1 %vm344_vm0, %v432_v48 }
 0x1b0   : > { %510 = vmatprep.mubr.f32.mxu1 %v841_v7 }
 0x1b3   : > { %637 = vmatmul.mubr.msk.f32.gmra.mrb[2].mxu1 %vm344_vm0, %v433_v49 }
 0x282   : > { %v506_v50 = vpop.f32.mrb[0].mxu1 }
 0x283   : > { %517 = vst [vmem:[%s287_s30] sm:$0xff] %v506_v50  ;;  %v508_v51 = vpop.f32.mrb[1].mxu1 }
 0x284   : > { %518 = vst [vmem:[%s287_s30 + $0x8] sm:$0xff] %v508_v51 }
 0x286   : > { %v512_v52 = vpop.f32.mrb[2].mxu1 }
 0x287   : > { %519 = vst [vmem:[%s287_s30 + $0x10] sm:$0xff] %v512_v52  ;;  %v514_v53 = vpop.f32.mrb[3].mxu1 }
 0x288   : > { %520 = vst [vmem:[%s287_s30 + $0x18] sm:$0xff] %v514_v53 }
 0x289   : > { %766 = shalt.err (!%p763_p5)
}
 0x28a   : > { %s767_s19 = scalar_lea.hbm %s1044_s27, 512  ;;  %s771_s30 = scalar_lea.hbm %s1099_s6, 1024 }
 0x28b   : > { %p768_p4 = scmp.ne.s32.totalorder %s1044_s27, %s767_s19  ;;  %p772_p12 = scmp.lt.u32.totalorder %s1044_s27, %s1099_s6 }
 0x28c   : > { %p773_p1 = scmp.lt.u32.totalorder %s771_s30, %s767_s19  ;;  %p775_p8 = scmp.lt.u32.totalorder %s767_s19, %s1044_s27 }
 0x28d   : > { %p769_p7 = pnand %p768_p4, %p1107_p9 }
 0x28e   : > { %p774_p3 = por %p773_p1, %p772_p12 }
 0x28f   : > { %p770_p10 = pneg %p769_p7 }
 0x290   : > { %p776_p11 = por %p775_p8, %p774_p3 }
 0x292   : > { %p777_p0 = pnand %p776_p11, %p770_p10 }
 0x294   : > { %780 = shalt.err (!%p777_p0)
}
 0x295   : > { %s843_s20 = smov 256   ;;  %s844_s13 = smov 16  }
 0x296   : > { %655 = dma.vmem_to_hbm [thread:$0]  (%p1107_p9), %s1039_s14, 512, %s1044_s27, %s522_s15, %s843_s20, %s843_s20, %s844_s13  }
 0x297 PF: > { %s552_s24 = sand.u32 1, %s815_s21   ;;  %p1108_p6 = scmp.ne.s32.totalorder %s1104_s12, 0 }
 0x298   : > { %p1109_p13 = scmp.ge.s32.totalorder %s835_s26, 2  ;;  %s553_s28 = scalar_lea.sflag [#allocation4], %s552_s24 }
 0x29a   : > { %p662_p2 = pnand %p1109_p13, %p1108_p6 }
 0x29c   : > { %810 = dma.done.wait (!%p662_p2), %s553_s28, 512  }
 0x29d   : > { %812 = vsyncadd (!%p662_p2), %s553_s28, 4294966784  ;;  %s22_s26 = sadd.s32 1, %s835_s26   ;;  %s1110_s21 = smov %s819_s22 }
 0x29e   : > { %p19_p5 = scmp.ge.s32.totalorder %s22_s26, 4   ;;  %s1111_s22 = smov %s823_s23 }
 0x29f   : > { %s1112_s23 = smov %s936_s11  ;;  %s1113_s24 = smov %s831_s25 }
 0x2a0   : > { %s1114_s25 = smov %s1116_s29  ;;  %21 = sbr.rel (!%p19_p5) target bundleno = 6 (0x6), region = 89 }
 0x2a7   :  { %558 = vsyncpa [#allocation3], 1 }
 0x2a8   :  { %560 = vsyncpa [#allocation3 + $0x1], 1 }
 0x2a9   :  { %561 = vsyncpa [#allocation4], 1 }
 0x2aa   :  { %563 = vsyncpa [#allocation4 + $0x1], 1 }

</bundles_post_ra>
